<compile_context>
chip_gen: v5e
topology: v5e:2x2
jax: 0.10.0
libtpu: 0.0.40
codegen_flags: <defaults>
</compile_context>

<pallas_src>
import jax
import jax.numpy as jnp
from jax.experimental import pallas as pl
from jax.experimental.pallas import tpu as pltpu


def _cross_attn_kernel(hs_ref, kd_ref, vd_ref, wq_ref, bq_ref,
                       segsum_ref, expand_ref, wproj_ref, bproj_ref, out_ref):
    """One grid step == one (batch, row-tile) of hidden_states.

    hs_ref     : (tb, E)  bf16   hidden-state rows for this (batch, tile)
    kd_ref     : (1, E)   f32    per-batch  k - no_op_k   (head-major flat)
    vd_ref     : (1, E)   f32    per-batch  v - no_op_v
    wq_ref     : (E, E)   bf16   c_attn_q weight
    bq_ref     : (1, E)   f32    c_attn_q bias
    segsum_ref : (E, H)   bf16   block-diag ones -> per-head segment sum
    expand_ref : (H, E)   bf16   block-diag ones -> per-head weight expansion
    wproj_ref  : (E, E)   bf16   c_proj weight
    bproj_ref  : (1, E)   f32    per-batch  c_proj bias + no_op_v @ c_proj
    """
    f32 = jnp.float32
    bf16 = jnp.bfloat16

    # c_attn_q
    q = jnp.dot(hs_ref[...], wq_ref[...], preferred_element_type=f32) + bq_ref[...]

    # Per-head logit difference s_h = q_h . (k_h - no_op_k_h): one MXU pass.
    # (The reference _attn applies NO 1/sqrt(d) scaling.)
    s = jnp.dot((q * kd_ref[...]).astype(bf16), segsum_ref[...],
                preferred_element_type=f32)                       # (tb, H)

    # 2-way softmax over [no_op, activation] keys == sigmoid of the logit
    # difference (exact; replaces max/exp/exp/approx-reciprocal of v2).
    w1 = 1.0 / (1.0 + jnp.exp(-s))                                # (tb, H)

    # merged = no_op_v + w1 * (v - no_op_v); the constant no_op_v part is folded
    # into bproj_ref by the wrapper, only the delta term is computed here.
    merged = jnp.dot(w1.astype(bf16), expand_ref[...],
                     preferred_element_type=f32) * vd_ref[...]    # (tb, E)

    # c_proj (+ folded no_op_v @ wproj + bproj)
    out = jnp.dot(merged.astype(bf16), wproj_ref[...],
                  preferred_element_type=f32) + bproj_ref[...]
    # TODO(synk): resid_dropout is identity at inference; stochastic dropout is
    # not implemented in the kernel.
    out_ref[...] = out.astype(out_ref.dtype)


def _vmem_capacity_bytes() -> int:
    try:
        return int(pltpu.get_tpu_info().vmem_capacity_bytes)
    except Exception:
        return 64 * 1024 * 1024        # v7x per-TC size: the conservative choice


def _choose_t_block(T: int, B: int) -> int:
    """Rows of hidden_states processed per grid step (per batch).

    * never balloons to one giant block (the wrapper pads T when no nice
      divisor exists),
    * larger cap on 128 MiB-VMEM parts (v5e/v6e) than on v7x (64 MiB),
    * when batch alone cannot feed v7x's two TensorCores, split T as well so
      the 'parallel' grid has >= 2 steps.
    """
    cap = 1024 if _vmem_capacity_bytes() >= (100 << 20) else 512
    if B == 1:
        cap = min(cap, max(8, ((-(-T // 2)) + 7) // 8 * 8))
    if T <= cap:
        return T                                   # full-extent block
    for tb in range((cap // 8) * 8, 7, -8):
        if T % tb == 0:
            return tb                              # divides T, multiple of 8
    return (cap // 8) * 8                          # fall back; wrapper pads T


def cross_attn_act_gpt2_attention(hidden_states, activation, params, num_heads,
                                  layer_past=None, use_cache=True):
    """Forward pass of CrossAttnActGPT2Attention (eval mode)."""
    f32 = jnp.float32
    bf16 = jnp.bfloat16

    B, T, E = hidden_states.shape
    H = num_heads
    d = E // H
    assert H * d == E

    wq = params["wq"].astype(f32)                          # (E, E)
    bq = params["bq"].reshape(1, E).astype(f32)
    wproj = params["wproj"].astype(f32)                    # (E, E)
    bproj = params["bproj"].reshape(1, E).astype(f32)
    nok_flat = params["no_op_k"].reshape(E).astype(f32)    # head-major (h*d + j)
    nov_flat = params["no_op_v"].reshape(E).astype(f32)

    if layer_past is None:
        # Tiny kv projection (B, A) @ (A, 2E): plain JAX, exact f32; feeds both
        # the `present` cache and the per-batch kernel operands.
        kv = (activation.astype(f32) @ params["wkv"].astype(f32)
              + params["bkv"].reshape(1, 2 * E).astype(f32))            # (B, 2E)
        k0 = jnp.broadcast_to(nok_flat[None, :], (B, E))
        v0 = jnp.broadcast_to(nov_flat[None, :], (B, E))
        k1 = kv[:, :E]
        v1 = kv[:, E:]
        key4 = jnp.stack([k0.reshape(B, H, d), k1.reshape(B, H, d)], axis=2)
        val4 = jnp.stack([v0.reshape(B, H, d), v1.reshape(B, H, d)], axis=2)
    else:
        key4, val4 = layer_past                              # (B, H, 2, d)
        assert key4.shape[2] == 2 and val4.shape[2] == 2, (
            "kernel supports the 2-entry [no_op, activation] cache only")
        k0 = key4[:, :, 0, :].reshape(B, E).astype(f32)
        k1 = key4[:, :, 1, :].reshape(B, E).astype(f32)
        v0 = val4[:, :, 0, :].reshape(B, E).astype(f32)
        v1 = val4[:, :, 1, :].reshape(B, E).astype(f32)

    present = (key4, val4) if use_cache else None

    # Sigmoid-form operands: per-batch deltas and folded projection bias.
    k_delta = (k1 - k0)[:, None, :]                          # (B, 1, E) f32
    v_delta = (v1 - v0)[:, None, :]                          # (B, 1, E) f32
    bproj_row = (v0 @ wproj + bproj)[:, None, :]             # (B, 1, E) f32

    # Block-structured helper matrices: per-head segment-sum / expansion as MXU
    # matmuls (no XLU reductions, no lane concatenates).  0/1 entries: exact bf16.
    head_of = jnp.arange(E, dtype=jnp.int32) // d
    onehot = head_of[:, None] == jnp.arange(H, dtype=jnp.int32)[None, :]
    segsum = onehot.astype(bf16)                             # (E, H)
    expand = onehot.T.astype(bf16)                           # (H, E)

    # Row tiling (per batch) + padding so the tile always divides the padded T.
    t_block = _choose_t_block(T, B)
    n_t = -(-T // t_block)
    T_pad = n_t * t_block
    hs = hidden_states.astype(bf16)
    if T_pad != T:
        hs = jnp.pad(hs, ((0, 0), (0, T_pad - T), (0, 0)))

    grid = (B, n_t)
    row_spec = pl.BlockSpec((None, t_block, E), lambda b, t: (b, t, 0))
    batch_spec = pl.BlockSpec((None, 1, E), lambda b, t: (b, 0, 0))
    out_dtype = hidden_states.dtype

    def build(single_buffer_consts):
        def const_spec(shape):
            nd = len(shape)
            if single_buffer_consts:
                return pl.BlockSpec(shape, lambda *_, _n=nd: (0,) * _n,
                                    pipeline_mode=pl.Buffered(1))
            return pl.BlockSpec(shape, lambda *_, _n=nd: (0,) * _n)

        return pl.pallas_call(
            _cross_attn_kernel,
            out_shape=jax.ShapeDtypeStruct((B, T_pad, E), out_dtype),
            grid=grid,
            in_specs=[
                row_spec,               # hidden_states
                batch_spec,             # k_delta
                batch_spec,             # v_delta
                const_spec((E, E)),     # wq
                const_spec((1, E)),     # bq
                const_spec((E, H)),     # segsum
                const_spec((H, E)),     # expand
                const_spec((E, E)),     # wproj
                batch_spec,             # bproj_row (per batch, no_op_v folded)
            ],
            out_specs=row_spec,
            compiler_params=pltpu.CompilerParams(
                dimension_semantics=("parallel", "parallel"),
                vmem_limit_bytes=64 * 1024 * 1024),
        )

    args = (hs, k_delta, v_delta, wq.astype(bf16), bq, segsum, expand,
            wproj.astype(bf16), bproj_row)
    try:
        attn = build(True)(*args)
    except Exception:
        # Running jax rejected pipeline_mode=pl.Buffered(1): fall back to the
        # default double-buffered constants (identical results, more VMEM).
        attn = build(False)(*args)

    attn_out = attn[:, :T, :] if T_pad != T else attn
    return attn_out, present


def ref_forward(hs, act, params, H):
    """Pure-JAX f32 reference mirroring the PyTorch forward (eval mode)."""
    B, T, E = hs.shape
    d = E // H
    q = hs @ params["wq"] + params["bq"]                       # (B,T,E)
    kv = act @ params["wkv"] + params["bkv"]                   # (B,2E)
    key = kv[:, :E].reshape(B, 1, H, d).transpose(0, 2, 1, 3)  # (B,H,1,d)
    val = kv[:, E:].reshape(B, 1, H, d).transpose(0, 2, 1, 3)
    nok = jnp.broadcast_to(params["no_op_k"], (B, H, 1, d))
    nov = jnp.broadcast_to(params["no_op_v"], (B, H, 1, d))
    key = jnp.concatenate([nok, key], axis=2)                  # (B,H,2,d)
    val = jnp.concatenate([nov, val], axis=2)
    qh = q.reshape(B, T, H, d).transpose(0, 2, 1, 3)           # (B,H,T,d)
    w = jnp.einsum("bhtd,bhkd->bhtk", qh, key)
    w = jax.nn.softmax(w, axis=-1)
    o = jnp.einsum("bhtk,bhkd->bhtd", w, val)
    o = o.transpose(0, 2, 1, 3).reshape(B, T, E)
    out = o @ params["wproj"] + params["bproj"]
    return out, (key, val)


if __name__ == "__main__":
    # config: hidden_size=32, num_attention_heads=4, act_proc_resid_dim=16
    B, T, E, H, A = 2, 8, 32, 4, 16
    d = E // H

    root = jax.random.PRNGKey(0)
    ks = jax.random.split(root, 10)
    # Deterministic synthetic parameters (module __init__ defines the shapes;
    # no_op_k/no_op_v are zero-init in the module, given small random values
    # here so the parameter path is exercised non-trivially).
    params = {
        "wq":      0.05 * jax.random.normal(ks[0], (E, E), jnp.float32),
        "bq":      0.02 * jax.random.normal(ks[1], (E,), jnp.float32),
        "wkv":     0.05 * jax.random.normal(ks[2], (A, 2 * E), jnp.float32),
        "bkv":     0.02 * jax.random.normal(ks[3], (2 * E,), jnp.float32),
        "no_op_k": 0.1 * jax.random.normal(ks[4], (1, H, 1, d), jnp.float32),
        "no_op_v": 0.1 * jax.random.normal(ks[5], (1, H, 1, d), jnp.float32),
        "wproj":   0.05 * jax.random.normal(ks[6], (E, E), jnp.float32),
        "bproj":   0.02 * jax.random.normal(ks[7], (E,), jnp.float32),
    }

    hidden_states = jax.random.normal(ks[8], (B, T, E), jnp.float32)
    activation = jax.random.normal(ks[9], (B, A), jnp.float32)

    attn_out, present = cross_attn_act_gpt2_attention(
        hidden_states, activation, params, H, use_cache=True)
    jax.block_until_ready(attn_out)

    ref_out, (ref_k, ref_v) = ref_forward(hidden_states, activation, params, H)

    # The sigmoid form is algebraically exact (no approx reciprocal anymore);
    # the tolerance only covers bf16 rounding of the MXU operands.
    assert jnp.allclose(attn_out, ref_out, atol=2e-3, rtol=2e-2), "attn mismatch"
    assert jnp.allclose(present[0], ref_k, atol=1e-6, rtol=1e-6), "key mismatch"
    assert jnp.allclose(present[1], ref_v, atol=1e-6, rtol=1e-6), "value mismatch"

    # layer_past path (reusing the 2-entry cache) must reproduce the same output.
    attn_out2, _ = cross_attn_act_gpt2_attention(
        hidden_states, activation, params, H, layer_past=present, use_cache=False)
    jax.block_until_ready(attn_out2)
    assert jnp.allclose(attn_out2, attn_out, atol=1e-5, rtol=1e-5), "layer_past mismatch"

    print("KERNEL_OK")
</pallas_src>

<mosaic_0001>
module attributes {stable_mosaic.version = 11 : i64} {
  func.func @_cross_attn_kernel(%arg0: i32, %arg1: i32, %arg2: memref<1x8x32xbf16, #tpu.memory_space<vmem>>, %arg3: memref<1x1x32xf32, #tpu.memory_space<vmem>>, %arg4: memref<1x1x32xf32, #tpu.memory_space<vmem>>, %arg5: memref<32x32xbf16, #tpu.memory_space<vmem>>, %arg6: memref<1x32xf32, #tpu.memory_space<vmem>>, %arg7: memref<32x4xbf16, #tpu.memory_space<vmem>>, %arg8: memref<4x32xbf16, #tpu.memory_space<vmem>>, %arg9: memref<32x32xbf16, #tpu.memory_space<vmem>>, %arg10: memref<1x1x32xf32, #tpu.memory_space<vmem>>, %arg11: memref<1x8x32xf32, #tpu.memory_space<vmem>>) attributes {dimension_semantics = [#tpu.dimension_semantics<parallel>, #tpu.dimension_semantics<parallel>], iteration_bounds = array<i64: 2, 1>, scalar_prefetch = 0 : i64, scratch_operands = 0 : i64, tpu.core_type = #tpu.core_type<tc>, window_params = [{transform_indices = @transform_0, window_bounds = array<i64: 1, 8, 32>}, {transform_indices = @transform_1, window_bounds = array<i64: 1, 1, 32>}, {transform_indices = @transform_2, window_bounds = array<i64: 1, 1, 32>}, {pipeline_mode = #tpu.pipeline_mode<synchronous>, transform_indices = @transform_3, window_bounds = array<i64: 32, 32>}, {pipeline_mode = #tpu.pipeline_mode<synchronous>, transform_indices = @transform_4, window_bounds = array<i64: 1, 32>}, {pipeline_mode = #tpu.pipeline_mode<synchronous>, transform_indices = @transform_5, window_bounds = array<i64: 32, 4>}, {pipeline_mode = #tpu.pipeline_mode<synchronous>, transform_indices = @transform_6, window_bounds = array<i64: 4, 32>}, {pipeline_mode = #tpu.pipeline_mode<synchronous>, transform_indices = @transform_7, window_bounds = array<i64: 32, 32>}, {transform_indices = @transform_8, window_bounds = array<i64: 1, 1, 32>}, {transform_indices = @transform_9, window_bounds = array<i64: 1, 8, 32>}]} {
    %c0 = arith.constant 0 : index
    %c0_0 = arith.constant 0 : index
    %c0_1 = arith.constant 0 : index
    %0 = vector.load %arg2[%c0, %c0_0, %c0_1] : memref<1x8x32xbf16, #tpu.memory_space<vmem>>, vector<1x8x32xbf16>
    %1 = vector.shape_cast %0 : vector<1x8x32xbf16> to vector<8x32xbf16>
    %c0_2 = arith.constant 0 : index
    %c0_3 = arith.constant 0 : index
    %2 = vector.load %arg5[%c0_2, %c0_3] : memref<32x32xbf16, #tpu.memory_space<vmem>>, vector<32x32xbf16>
    %cst = arith.constant dense<0.000000e+00> : vector<8x32xf32>
    %3 = tpu.matmul %1, %2, %cst {dimension_numbers = #tpu.dot_dimension_numbers<[1], [0], [0], [1], [0, 0, 1, 1], [], []>} : vector<8x32xbf16>, vector<32x32xbf16>, vector<8x32xf32> -> vector<8x32xf32>
    %c0_4 = arith.constant 0 : index
    %c0_5 = arith.constant 0 : index
    %4 = vector.load %arg6[%c0_4, %c0_5] : memref<1x32xf32, #tpu.memory_space<vmem>>, vector<1x32xf32>
    %5 = vector.broadcast %4 : vector<1x32xf32> to vector<8x32xf32>
    %6 = arith.addf %3, %5 : vector<8x32xf32>
    %c0_6 = arith.constant 0 : index
    %c0_7 = arith.constant 0 : index
    %c0_8 = arith.constant 0 : index
    %7 = vector.load %arg3[%c0_6, %c0_7, %c0_8] : memref<1x1x32xf32, #tpu.memory_space<vmem>>, vector<1x1x32xf32>
    %8 = vector.shape_cast %7 : vector<1x1x32xf32> to vector<1x32xf32>
    %9 = vector.broadcast %8 : vector<1x32xf32> to vector<8x32xf32>
    %10 = arith.mulf %6, %9 : vector<8x32xf32>
    %11 = arith.truncf %10 : vector<8x32xf32> to vector<8x32xbf16>
    %c0_9 = arith.constant 0 : index
    %c0_10 = arith.constant 0 : index
    %12 = vector.load %arg7[%c0_9, %c0_10] : memref<32x4xbf16, #tpu.memory_space<vmem>>, vector<32x4xbf16>
    %cst_11 = arith.constant dense<0.000000e+00> : vector<8x4xf32>
    %13 = tpu.matmul %11, %12, %cst_11 {dimension_numbers = #tpu.dot_dimension_numbers<[1], [0], [0], [1], [0, 0, 1, 1], [], []>} : vector<8x32xbf16>, vector<32x4xbf16>, vector<8x4xf32> -> vector<8x4xf32>
    %cst_12 = arith.constant 0.000000e+00 : f32
    %14 = vector.broadcast %cst_12 : f32 to vector<8x4xf32>
    %15 = arith.subf %14, %13 : vector<8x4xf32>
    %16 = math.exp %15 : vector<8x4xf32>
    %cst_13 = arith.constant 1.000000e+00 : f32
    %17 = vector.broadcast %cst_13 : f32 to vector<8x4xf32>
    %18 = arith.addf %17, %16 : vector<8x4xf32>
    %cst_14 = arith.constant 1.000000e+00 : f32
    %19 = vector.broadcast %cst_14 : f32 to vector<8x4xf32>
    %20 = arith.divf %19, %18 : vector<8x4xf32>
    %21 = arith.truncf %20 : vector<8x4xf32> to vector<8x4xbf16>
    %c0_15 = arith.constant 0 : index
    %c0_16 = arith.constant 0 : index
    %22 = vector.load %arg8[%c0_15, %c0_16] : memref<4x32xbf16, #tpu.memory_space<vmem>>, vector<4x32xbf16>
    %cst_17 = arith.constant dense<0.000000e+00> : vector<8x32xf32>
    %23 = tpu.matmul %21, %22, %cst_17 {dimension_numbers = #tpu.dot_dimension_numbers<[1], [0], [0], [1], [0, 0, 1, 1], [], []>} : vector<8x4xbf16>, vector<4x32xbf16>, vector<8x32xf32> -> vector<8x32xf32>
    %c0_18 = arith.constant 0 : index
    %c0_19 = arith.constant 0 : index
    %c0_20 = arith.constant 0 : index
    %24 = vector.load %arg4[%c0_18, %c0_19, %c0_20] : memref<1x1x32xf32, #tpu.memory_space<vmem>>, vector<1x1x32xf32>
    %25 = vector.shape_cast %24 : vector<1x1x32xf32> to vector<1x32xf32>
    %26 = vector.broadcast %25 : vector<1x32xf32> to vector<8x32xf32>
    %27 = arith.mulf %23, %26 : vector<8x32xf32>
    %28 = arith.truncf %27 : vector<8x32xf32> to vector<8x32xbf16>
    %c0_21 = arith.constant 0 : index
    %c0_22 = arith.constant 0 : index
    %29 = vector.load %arg9[%c0_21, %c0_22] : memref<32x32xbf16, #tpu.memory_space<vmem>>, vector<32x32xbf16>
    %cst_23 = arith.constant dense<0.000000e+00> : vector<8x32xf32>
    %30 = tpu.matmul %28, %29, %cst_23 {dimension_numbers = #tpu.dot_dimension_numbers<[1], [0], [0], [1], [0, 0, 1, 1], [], []>} : vector<8x32xbf16>, vector<32x32xbf16>, vector<8x32xf32> -> vector<8x32xf32>
    %c0_24 = arith.constant 0 : index
    %c0_25 = arith.constant 0 : index
    %c0_26 = arith.constant 0 : index
    %31 = vector.load %arg10[%c0_24, %c0_25, %c0_26] : memref<1x1x32xf32, #tpu.memory_space<vmem>>, vector<1x1x32xf32>
    %32 = vector.shape_cast %31 : vector<1x1x32xf32> to vector<1x32xf32>
    %33 = vector.broadcast %32 : vector<1x32xf32> to vector<8x32xf32>
    %34 = arith.addf %30, %33 : vector<8x32xf32>
    %c0_27 = arith.constant 0 : index
    %c0_28 = arith.constant 0 : index
    %c0_29 = arith.constant 0 : index
    %35 = vector.load %arg11[%c0_27, %c0_28, %c0_29] : memref<1x8x32xf32, #tpu.memory_space<vmem>>, vector<1x8x32xf32>
    %36 = vector.shape_cast %35 : vector<1x8x32xf32> to vector<8x32xf32>
    %37 = vector.shape_cast %34 : vector<8x32xf32> to vector<1x8x32xf32>
    tpu.vector_store %arg11[%c0_27, %c0_28, %c0_29], %37 {strides = array<i32>} : memref<1x8x32xf32, #tpu.memory_space<vmem>>, vector<1x8x32xf32>,
    return
  }
  func.func @transform_0(%arg0: i32, %arg1: i32) -> (i32, i32, i32) {
    %c0_i32 = arith.constant 0 : i32
    %c0_i32_0 = arith.constant 0 : i32
    return %arg0, %arg1, %c0_i32 : i32, i32, i32
  }
  func.func @transform_1(%arg0: i32, %arg1: i32) -> (i32, i32, i32) {
    %c0_i32 = arith.constant 0 : i32
    %c0_i32_0 = arith.constant 0 : i32
    %c0_i32_1 = arith.constant 0 : i32
    return %arg0, %c0_i32, %c0_i32_0 : i32, i32, i32
  }
  func.func @transform_2(%arg0: i32, %arg1: i32) -> (i32, i32, i32) {
    %c0_i32 = arith.constant 0 : i32
    %c0_i32_0 = arith.constant 0 : i32
    %c0_i32_1 = arith.constant 0 : i32
    return %arg0, %c0_i32, %c0_i32_0 : i32, i32, i32
  }
  func.func @transform_3(%arg0: i32, %arg1: i32) -> (i32, i32) {
    %c0_i32 = arith.constant 0 : i32
    %c0_i32_0 = arith.constant 0 : i32
    %c0_i32_1 = arith.constant 0 : i32
    return %c0_i32, %c0_i32_0 : i32, i32
  }
  func.func @transform_4(%arg0: i32, %arg1: i32) -> (i32, i32) {
    %c0_i32 = arith.constant 0 : i32
    %c0_i32_0 = arith.constant 0 : i32
    %c0_i32_1 = arith.constant 0 : i32
    return %c0_i32, %c0_i32_0 : i32, i32
  }
  func.func @transform_5(%arg0: i32, %arg1: i32) -> (i32, i32) {
    %c0_i32 = arith.constant 0 : i32
    %c0_i32_0 = arith.constant 0 : i32
    %c0_i32_1 = arith.constant 0 : i32
    return %c0_i32, %c0_i32_0 : i32, i32
  }
  func.func @transform_6(%arg0: i32, %arg1: i32) -> (i32, i32) {
    %c0_i32 = arith.constant 0 : i32
    %c0_i32_0 = arith.constant 0 : i32
    %c0_i32_1 = arith.constant 0 : i32
    return %c0_i32, %c0_i32_0 : i32, i32
  }
  func.func @transform_7(%arg0: i32, %arg1: i32) -> (i32, i32) {
    %c0_i32 = arith.constant 0 : i32
    %c0_i32_0 = arith.constant 0 : i32
    %c0_i32_1 = arith.constant 0 : i32
    return %c0_i32, %c0_i32_0 : i32, i32
  }
  func.func @transform_8(%arg0: i32, %arg1: i32) -> (i32, i32, i32) {
    %c0_i32 = arith.constant 0 : i32
    %c0_i32_0 = arith.constant 0 : i32
    %c0_i32_1 = arith.constant 0 : i32
    return %arg0, %c0_i32, %c0_i32_0 : i32, i32, i32
  }
  func.func @transform_9(%arg0: i32, %arg1: i32) -> (i32, i32, i32) {
    %c0_i32 = arith.constant 0 : i32
    %c0_i32_0 = arith.constant 0 : i32
    return %arg0, %arg1, %c0_i32 : i32, i32, i32
  }
}

module attributes {stable_mosaic.version = 11 : i64} {
  func.func @_cross_attn_kernel(%arg0: i32, %arg1: i32, %arg2: memref<1x8x32xbf16, #tpu.memory_space<vmem>>, %arg3: memref<1x1x32xf32, #tpu.memory_space<vmem>>, %arg4: memref<1x1x32xf32, #tpu.memory_space<vmem>>, %arg5: memref<32x32xbf16, #tpu.memory_space<vmem>>, %arg6: memref<1x32xf32, #tpu.memory_space<vmem>>, %arg7: memref<32x4xbf16, #tpu.memory_space<vmem>>, %arg8: memref<4x32xbf16, #tpu.memory_space<vmem>>, %arg9: memref<32x32xbf16, #tpu.memory_space<vmem>>, %arg10: memref<1x1x32xf32, #tpu.memory_space<vmem>>, %arg11: memref<1x8x32xf32, #tpu.memory_space<vmem>>) attributes {dimension_semantics = [#tpu.dimension_semantics<parallel>, #tpu.dimension_semantics<parallel>], iteration_bounds = array<i64: 2, 1>, scalar_prefetch = 0 : i64, scratch_operands = 0 : i64, tpu.core_type = #tpu.core_type<tc>, window_params = [{transform_indices = @transform_0, window_bounds = array<i64: 1, 8, 32>}, {transform_indices = @transform_1, window_bounds = array<i64: 1, 1, 32>}, {transform_indices = @transform_2, window_bounds = array<i64: 1, 1, 32>}, {pipeline_mode = #tpu.pipeline_mode<synchronous>, transform_indices = @transform_3, window_bounds = array<i64: 32, 32>}, {pipeline_mode = #tpu.pipeline_mode<synchronous>, transform_indices = @transform_4, window_bounds = array<i64: 1, 32>}, {pipeline_mode = #tpu.pipeline_mode<synchronous>, transform_indices = @transform_5, window_bounds = array<i64: 32, 4>}, {pipeline_mode = #tpu.pipeline_mode<synchronous>, transform_indices = @transform_6, window_bounds = array<i64: 4, 32>}, {pipeline_mode = #tpu.pipeline_mode<synchronous>, transform_indices = @transform_7, window_bounds = array<i64: 32, 32>}, {transform_indices = @transform_8, window_bounds = array<i64: 1, 1, 32>}, {transform_indices = @transform_9, window_bounds = array<i64: 1, 8, 32>}]} {
    %c0 = arith.constant 0 : index
    %c0_0 = arith.constant 0 : index
    %c0_1 = arith.constant 0 : index
    %0 = vector.load %arg2[%c0, %c0_0, %c0_1] : memref<1x8x32xbf16, #tpu.memory_space<vmem>>, vector<1x8x32xbf16>
    %1 = vector.shape_cast %0 : vector<1x8x32xbf16> to vector<8x32xbf16>
    %c0_2 = arith.constant 0 : index
    %c0_3 = arith.constant 0 : index
    %2 = vector.load %arg5[%c0_2, %c0_3] : memref<32x32xbf16, #tpu.memory_space<vmem>>, vector<32x32xbf16>
    %cst = arith.constant dense<0.000000e+00> : vector<8x32xf32>
    %3 = tpu.matmul %1, %2, %cst {dimension_numbers = #tpu.dot_dimension_numbers<[1], [0], [0], [1], [0, 0, 1, 1], [], []>} : vector<8x32xbf16>, vector<32x32xbf16>, vector<8x32xf32> -> vector<8x32xf32>
    %c0_4 = arith.constant 0 : index
    %c0_5 = arith.constant 0 : index
    %4 = vector.load %arg6[%c0_4, %c0_5] : memref<1x32xf32, #tpu.memory_space<vmem>>, vector<1x32xf32>
    %5 = vector.broadcast %4 : vector<1x32xf32> to vector<8x32xf32>
    %6 = arith.addf %3, %5 : vector<8x32xf32>
    %c0_6 = arith.constant 0 : index
    %c0_7 = arith.constant 0 : index
    %c0_8 = arith.constant 0 : index
    %7 = vector.load %arg3[%c0_6, %c0_7, %c0_8] : memref<1x1x32xf32, #tpu.memory_space<vmem>>, vector<1x1x32xf32>
    %8 = vector.shape_cast %7 : vector<1x1x32xf32> to vector<1x32xf32>
    %9 = vector.broadcast %8 : vector<1x32xf32> to vector<8x32xf32>
    %10 = arith.mulf %6, %9 : vector<8x32xf32>
    %11 = arith.truncf %10 : vector<8x32xf32> to vector<8x32xbf16>
    %c0_9 = arith.constant 0 : index
    %c0_10 = arith.constant 0 : index
    %12 = vector.load %arg7[%c0_9, %c0_10] : memref<32x4xbf16, #tpu.memory_space<vmem>>, vector<32x4xbf16>
    %cst_11 = arith.constant dense<0.000000e+00> : vector<8x4xf32>
    %13 = tpu.matmul %11, %12, %cst_11 {dimension_numbers = #tpu.dot_dimension_numbers<[1], [0], [0], [1], [0, 0, 1, 1], [], []>} : vector<8x32xbf16>, vector<32x4xbf16>, vector<8x4xf32> -> vector<8x4xf32>
    %cst_12 = arith.constant 0.000000e+00 : f32
    %14 = vector.broadcast %cst_12 : f32 to vector<8x4xf32>
    %15 = arith.subf %14, %13 : vector<8x4xf32>
    %16 = math.exp %15 : vector<8x4xf32>
    %cst_13 = arith.constant 1.000000e+00 : f32
    %17 = vector.broadcast %cst_13 : f32 to vector<8x4xf32>
    %18 = arith.addf %17, %16 : vector<8x4xf32>
    %cst_14 = arith.constant 1.000000e+00 : f32
    %19 = vector.broadcast %cst_14 : f32 to vector<8x4xf32>
    %20 = arith.divf %19, %18 : vector<8x4xf32>
    %21 = arith.truncf %20 : vector<8x4xf32> to vector<8x4xbf16>
    %c0_15 = arith.constant 0 : index
    %c0_16 = arith.constant 0 : index
    %22 = vector.load %arg8[%c0_15, %c0_16] : memref<4x32xbf16, #tpu.memory_space<vmem>>, vector<4x32xbf16>
    %cst_17 = arith.constant dense<0.000000e+00> : vector<8x32xf32>
    %23 = tpu.matmul %21, %22, %cst_17 {dimension_numbers = #tpu.dot_dimension_numbers<[1], [0], [0], [1], [0, 0, 1, 1], [], []>} : vector<8x4xbf16>, vector<4x32xbf16>, vector<8x32xf32> -> vector<8x32xf32>
    %c0_18 = arith.constant 0 : index
    %c0_19 = arith.constant 0 : index
    %c0_20 = arith.constant 0 : index
    %24 = vector.load %arg4[%c0_18, %c0_19, %c0_20] : memref<1x1x32xf32, #tpu.memory_space<vmem>>, vector<1x1x32xf32>
    %25 = vector.shape_cast %24 : vector<1x1x32xf32> to vector<1x32xf32>
    %26 = vector.broadcast %25 : vector<1x32xf32> to vector<8x32xf32>
    %27 = arith.mulf %23, %26 : vector<8x32xf32>
    %28 = arith.truncf %27 : vector<8x32xf32> to vector<8x32xbf16>
    %c0_21 = arith.constant 0 : index
    %c0_22 = arith.constant 0 : index
    %29 = vector.load %arg9[%c0_21, %c0_22] : memref<32x32xbf16, #tpu.memory_space<vmem>>, vector<32x32xbf16>
    %cst_23 = arith.constant dense<0.000000e+00> : vector<8x32xf32>
    %30 = tpu.matmul %28, %29, %cst_23 {dimension_numbers = #tpu.dot_dimension_numbers<[1], [0], [0], [1], [0, 0, 1, 1], [], []>} : vector<8x32xbf16>, vector<32x32xbf16>, vector<8x32xf32> -> vector<8x32xf32>
    %c0_24 = arith.constant 0 : index
    %c0_25 = arith.constant 0 : index
    %c0_26 = arith.constant 0 : index
    %31 = vector.load %arg10[%c0_24, %c0_25, %c0_26] : memref<1x1x32xf32, #tpu.memory_space<vmem>>, vector<1x1x32xf32>
    %32 = vector.shape_cast %31 : vector<1x1x32xf32> to vector<1x32xf32>
    %33 = vector.broadcast %32 : vector<1x32xf32> to vector<8x32xf32>
    %34 = arith.addf %30, %33 : vector<8x32xf32>
    %c0_27 = arith.constant 0 : index
    %c0_28 = arith.constant 0 : index
    %c0_29 = arith.constant 0 : index
    %35 = vector.load %arg11[%c0_27, %c0_28, %c0_29] : memref<1x8x32xf32, #tpu.memory_space<vmem>>, vector<1x8x32xf32>
    %36 = vector.shape_cast %35 : vector<1x8x32xf32> to vector<8x32xf32>
    %37 = vector.shape_cast %34 : vector<8x32xf32> to vector<1x8x32xf32>
    tpu.vector_store %arg11[%c0_27, %c0_28, %c0_29], %37 {strides = array<i32>} : memref<1x8x32xf32, #tpu.memory_space<vmem>>, vector<1x8x32xf32>,
    return
  }
  func.func @transform_0(%arg0: i32, %arg1: i32) -> (i32, i32, i32) {
    %c0_i32 = arith.constant 0 : i32
    %c0_i32_0 = arith.constant 0 : i32
    return %arg0, %arg1, %c0_i32 : i32, i32, i32
  }
  func.func @transform_1(%arg0: i32, %arg1: i32) -> (i32, i32, i32) {
    %c0_i32 = arith.constant 0 : i32
    %c0_i32_0 = arith.constant 0 : i32
    %c0_i32_1 = arith.constant 0 : i32
    return %arg0, %c0_i32, %c0_i32_0 : i32, i32, i32
  }
  func.func @transform_2(%arg0: i32, %arg1: i32) -> (i32, i32, i32) {
    %c0_i32 = arith.constant 0 : i32
    %c0_i32_0 = arith.constant 0 : i32
    %c0_i32_1 = arith.constant 0 : i32
    return %arg0, %c0_i32, %c0_i32_0 : i32, i32, i32
  }
  func.func @transform_3(%arg0: i32, %arg1: i32) -> (i32, i32) {
    %c0_i32 = arith.constant 0 : i32
    %c0_i32_0 = arith.constant 0 : i32
    %c0_i32_1 = arith.constant 0 : i32
    return %c0_i32, %c0_i32_0 : i32, i32
  }
  func.func @transform_4(%arg0: i32, %arg1: i32) -> (i32, i32) {
    %c0_i32 = arith.constant 0 : i32
    %c0_i32_0 = arith.constant 0 : i32
    %c0_i32_1 = arith.constant 0 : i32
    return %c0_i32, %c0_i32_0 : i32, i32
  }
  func.func @transform_5(%arg0: i32, %arg1: i32) -> (i32, i32) {
    %c0_i32 = arith.constant 0 : i32
    %c0_i32_0 = arith.constant 0 : i32
    %c0_i32_1 = arith.constant 0 : i32
    return %c0_i32, %c0_i32_0 : i32, i32
  }
  func.func @transform_6(%arg0: i32, %arg1: i32) -> (i32, i32) {
    %c0_i32 = arith.constant 0 : i32
    %c0_i32_0 = arith.constant 0 : i32
    %c0_i32_1 = arith.constant 0 : i32
    return %c0_i32, %c0_i32_0 : i32, i32
  }
  func.func @transform_7(%arg0: i32, %arg1: i32) -> (i32, i32) {
    %c0_i32 = arith.constant 0 : i32
    %c0_i32_0 = arith.constant 0 : i32
    %c0_i32_1 = arith.constant 0 : i32
    return %c0_i32, %c0_i32_0 : i32, i32
  }
  func.func @transform_8(%arg0: i32, %arg1: i32) -> (i32, i32, i32) {
    %c0_i32 = arith.constant 0 : i32
    %c0_i32_0 = arith.constant 0 : i32
    %c0_i32_1 = arith.constant 0 : i32
    return %arg0, %c0_i32, %c0_i32_0 : i32, i32, i32
  }
  func.func @transform_9(%arg0: i32, %arg1: i32) -> (i32, i32, i32) {
    %c0_i32 = arith.constant 0 : i32
    %c0_i32_0 = arith.constant 0 : i32
    return %arg0, %arg1, %c0_i32 : i32, i32, i32
  }
}

</mosaic_0001>

<bundles_post_ra>
// kernel: tpu_custom_call.1
= control target key start
LH: loop header
LB: loop body
LE: loop exit
PB: predicated region body
PF: predicated region fallthrough
CT: control target
= control target key end

     0   :  { %s1394_s0 = inlined_call_operand.hbm [shape: bf16[2,8,32], index: 0, kind: input, shape index: {}]   ;;  %s1395_s1 = inlined_call_operand.vmem [shape: f32[2,1,32], index: 1, kind: input, shape index: {}]   ;;  %s1396_s2 = inlined_call_operand.hbm [shape: f32[2,1,32], index: 2, kind: input, shape index: {}]   ;;  %s1397_s3 = inlined_call_operand.vmem [shape: bf16[32,32], index: 3, kind: input, shape index: {}]   ;;  %s1398_s4 = inlined_call_operand.hbm [shape: f32[1,32], index: 4, kind: input, shape index: {}]   ;;  %s1399_s5 = inlined_call_operand.vmem [shape: bf16[32,4], index: 5, kind: input, shape index: {}]   ;;  %s1400_s6 = inlined_call_operand.vmem [shape: bf16[4,32], index: 6, kind: input, shape index: {}]   ;;  %s1401_s7 = inlined_call_operand.hbm [shape: bf16[32,32], index: 7, kind: input, shape index: {}]   ;;  %s1402_s8 = inlined_call_operand.vmem [shape: f32[2,1,32], index: 8, kind: input, shape index: {}]   ;;  %s1403_s9 = inlined_call_operand.hbm [shape: f32[2,8,32], index: 9, kind: output, shape index: {}]  }
   0x1   :  { %1411 = sst [smem:[#allocation22_spill]] %s1398_s4 }
   0x2   :  { %1412 = sst [smem:[#allocation23_spill]] %s1401_s7 }
   0x3   :  { %1413 = sst [smem:[#allocation24_spill]] %s1402_s8 }
   0x4   :  { %1414 = sst [smem:[#allocation25_spill]] %s1403_s9 }
   0x5   :  { %14 = vsyncpa [#allocation3], 0 }
   0x6   :  { %16 = vsyncpa [#allocation3 + $0x1], 0 }
   0x7   :  { %17 = vsyncpa [#allocation6], 0 }
   0x8   :  { %19 = vsyncpa [#allocation6 + $0x1], 0 }
   0x9   :  { %20 = vsyncpa [#allocation9], 0 }
   0xa   :  { %21 = vsyncpa [#allocation4], 0 }
   0xb   :  { %23 = vsyncpa [#allocation4 + $0x1], 0  ;;  %s1195_s30 = smov 0   ;;  %s1197_s10 = smov 0  }
   0xc   :  { %s1199_s11 = smov 0   ;;  %s1201_s12 = smov 0  }
   0xd   :  { %s1203_s13 = smov 0   ;;  %s1205_s14 = smov 0  }
   0xe LB: > { %1415 = sst [smem:[#allocation16_spill]] %s1119_s30  ;;  %s1226_s15 = sadd.s32 4294967295, %s1139_s14   ;;  %s1139_s14 = sphi %s1205_s14, %s29_s14   ;;  %s1135_s13 = sphi %s1203_s13, %s1439_s13   ;;  %s1131_s12 = sphi %s1201_s12, %s1438_s12   ;;  %s1127_s11 = sphi %s1199_s11, %s1434_s11   ;;  %s1123_s10 = sphi %s1197_s10, %s1437_s10   ;;  %s1119_s30 = sphi %s1195_s30, %s1436_s30  }
   0xf   : > { %1416 = sst [smem:[#allocation17_spill]] %s1127_s11  ;;  %s777_s16 = sadd.s32 4294967294, %s1139_s14  }
  0x10   : > { %p63_p0 = scmp.ne.s32.totalorder %s1123_s10, %s1119_s30  ;;  %p64_p1 = scmp.eq.s32.totalorder %s1226_s15, 0 }
  0x11   : > { %p272_p2 = scmp.eq.s32.totalorder %s1226_s15, 1  ;;  %p278_p3 = scmp.eq.s32.totalorder %s777_s16, 1 }
  0x12   : > { %p1235_p4 = por %p64_p1, %p63_p0  ;;  %p778_p5 = scmp.ge.s32.totalorder %s1139_s14, 1 }
  0x13   : > { %p1240_p6 = por %p278_p3, %p63_p0  ;;  %p285_p7 = scmp.lt.s32.totalorder %s1139_s14, 3 }
  0x14   : > { %s1420_s4 = sld [smem:[#allocation22_spill]]  ;;  %p781_p9 = scmp.ge.s32.totalorder %s1139_s14, 2 }
  0x15   : > { %s1418_s18 = scalar_select %p1240_p6, 1, 0 }
  0x16   : > { %p1248_p8 = pnand %p778_p5, %p285_p7  ;;  %s1141_s23 = smov [#allocation7]  }
  0x17   : > { %1419 = sst [smem:[#allocation18_spill]] %s1418_s18  ;;  %s302_s24 = sshll.u32 %s1141_s23, 4  ;;  %s303_s24 = int_to_ptr.vmem [resolvable:$true] %s302_s24 }
  0x18   : > { %p841_p10 = pneg %p1248_p8  ;;  %s1422_s7 = sld [smem:[#allocation23_spill]] }
  0x19   : > { %s1142_s28 = smov [#allocation8]   ;;  %s1143_s16 = smov 64  }
  0x1a   : > { %s300_s21 = sshll.u32 %s1420_s4, 4  ;;  %p842_p11 = pnand %p841_p10, %p64_p1  ;;  %s301_s21 = int_to_ptr.hbm [resolvable:$true] %s300_s21 }
  0x1b   : > { %s319_s29 = sshll.u32 %s1142_s28, 4  ;;  %s1144_s19 = smov 4   ;;  %s320_s29 = int_to_ptr.vmem [resolvable:$true] %s319_s29 }
  0x1c   : > { %844 = dma.hbm_to_vmem [thread:$0]  (!%p842_p11), %s301_s21, 16, %s303_s24, [#allocation6]  }
  0x1d   : > { %s41_s20 = sadd.s32 1, %s1135_s13  ;;  %s50_s23 = sadd.s32 1, %s1127_s11 }
  0x1e   : > { %s317_s27 = sshll.u32 %s1422_s7, 4  ;;  %p43_p12 = scmp.ge.s32.totalorder %s41_s20, 2  ;;  %s318_s27 = int_to_ptr.hbm [resolvable:$true] %s317_s27 }
  0x1f   : > { %847 = dma.hbm_to_vmem [thread:$0]  (!%p842_p11), %s318_s27, 256, %s320_s29, [#allocation9], %s1143_s16, %s1143_s16, %s1144_s19  }
  0x20   : > { %p57_p13 = scmp.ne.s32.totalorder %s1127_s11, %s1123_s10  ;;  %p58_p0 = scmp.eq.s32.totalorder %s1139_s14, 0 }
  0x21   : > { %p861_p3 = scmp.lt.s32.totalorder %s1139_s14, 2  ;;  %s1441_s20 = smov (%p43_p12, %s41_s20), 0 }
  0x22   : > { %1423 = sst [smem:[#allocation19_spill]] %s1441_s20  ;;  %p1268_p5 = por %p58_p0, %p57_p13 }
  0x23   : > { %p1274_p7 = por %p272_p2, %p57_p13  ;;  %s45_s24 = ssub.s32 %s1135_s13, %s1441_s20 }
  0x24   : > { %s333_s26 = sand.u32 1, %s1127_s11   ;;  %p48_p10 = scmp.eq.s32.totalorder %s45_s24, 0 }
  0x25   : > { %s1425_s21 = scalar_select %p1274_p7, 1, 0 }
  0x26   : > { %s782_s27 = sshll.u32 %s333_s26, 2  ;;  %s783_s28 = sshll.u32 %s1135_s13, 2 }
  0x27   : > { %1426 = sst [smem:[#allocation20_spill]] %s1425_s21  ;;  %s342_s4 = scalar_lea.hbm %s1394_s0, %s783_s28 }
  0x28   : > { %s1283_s29 = scalar_select %p48_p10, %s1127_s11, %s50_s23  }
  0x29   : > { %s344_s7 = sshll.u32 %s342_s4, 4  ;;  %s337_s18 = scalar_lea.vmem [#allocation2], %s782_s27  ;;  %s345_s7 = int_to_ptr.hbm [resolvable:$true] %s344_s7 }
  0x2a   : > { %1427 = sst [smem:[#allocation21_spill]] %s1283_s29  ;;  %s346_s30 = sshll.u32 %s337_s18, 4  ;;  %s347_s30 = int_to_ptr.vmem [resolvable:$true] %s346_s30 }
  0x2b   : > { %p849_p2 = pnand %p861_p3, %p1268_p5  ;;  %s359_s21 = sand.u32 1, %s1139_s14  }
  0x2c   : > { %s365_s24 = scalar_lea.hbm %s1396_s2, %s1135_s13  ;;  %s334_s8 = scalar_lea.sflag [#allocation3], %s333_s26 }
  0x2d   : > { %851 = dma.hbm_to_vmem [thread:$0]  (!%p849_p2), %s345_s7, 64, %s347_s30, %s334_s8  }
  0x2e   : > { %s367_s23 = sshll.u32 %s365_s24, 4  ;;  %s362_s29 = scalar_lea.vmem [#allocation5], %s333_s26  ;;  %s368_s23 = int_to_ptr.hbm [resolvable:$true] %s367_s23 }
  0x2f   : > { %s369_s11 = sshll.u32 %s362_s29, 4  ;;  %s360_s4 = scalar_lea.sflag [#allocation6], %s359_s21  ;;  %s370_s11 = int_to_ptr.vmem [resolvable:$true] %s369_s11 }
  0x30   : > { %854 = dma.hbm_to_vmem [thread:$0]  (!%p849_p2), %s368_s23, 16, %s370_s11, %s360_s4  }
  0x31   : > { %384 = sbr.rel (%p1248_p8) target bundleno = 636 (0x27c), region = 56  ;;  %s1300_s18 = sand.u32 (!%p1248_p8), 1, %s1123_s10  }
  0x32   : > { %s785_s9 = sshll.u32 (!%p1248_p8), %s1300_s18, 2  ;;  %s387_s20 = scalar_lea.sflag (!%p1248_p8), [#allocation3], %s1300_s18 }
  0x33   : > { %s390_s25 = scalar_lea.vmem (!%p1248_p8), [#allocation2], %s785_s9 }
  0x36   : > { %1098 = dma.done.wait (%p1235_p4), %s387_s20, 64  }
  0x37   : > { %1100 = vsyncadd (%p1235_p4), %s387_s20, 4294967232  ;;  %s396_s7 = sand.u32 1, %s1226_s15   ;;  %s399_s30 = scalar_lea.vmem [#allocation5], %s1300_s18 }
  0x38   : > { %s397_s8 = scalar_lea.sflag [#allocation6], %s396_s7 }
  0x39   : > { %1102 = dma.done.wait (%p1235_p4), %s397_s8, 16  }
  0x3a   : > { %1104 = vsyncadd (%p1235_p4), %s397_s8, 4294967280 }
  0x3b   : > { %1106 = dma.done.wait (%p64_p1), [#allocation6], 16  }
  0x3c   : > { %1108 = vsyncadd (%p64_p1), [#allocation6], 4294967280 }
  0x3d   : > { %1110 = dma.done.wait (%p64_p1), [#allocation9], 256  }
  0x3e   : > { %1112 = vsyncadd (%p64_p1), [#allocation9], 4294967040  ;;  %p455_p8 = scmp.lt.s32.totalorder %s1131_s12, 1  ;;  %v822_v0 = vld [vmem:[%s1397_s3 + $0x8] sm:$0xff]  ;;  %v821_v1 = vld [vmem:[%s1397_s3] sm:$0xff]  ;;  %vm483_vm0 = vcmask 261120  }
  0x3f   : > { %493 = vmatpush.bf16.msra.mxu0 %v822_v0  ;;  %v462_v2 = vld [vmem:[%s390_s25] sm:$0xf]  ;;  %v824_v3 = vld [vmem:[%s1399_s5 + $0x8] sm:$0xff]  ;;  %vm563_vm1 = vcmask 1041408   ;;  %v826_v16 = vld [vmem:[#allocation8 + $0x8] sm:$0xff]  ;;  %vm559_vm6 = vcmask 31744  }
  0x40   : > { %s1324_s11 = scalar_select %p455_p8, %s1131_s12, 1  ;;  %531 = vmatpush.bf16.msra.mxu1 %v824_v3  ;;  %v823_v4 = vld [vmem:[%s1399_s5] sm:$0xff]  ;;  %v917_v5 = vld [vmem:[#allocation7] ss:$0 sm:$0xff]  ;;  %615 = vmatpush.bf16.msra.mxu3 %v826_v16  ;;  %v825_v32 = vld [vmem:[#allocation8] sm:$0xff] }
  0x41   : > { %v558_v12 = vld [vmem:[%s1400_s6] sm:$0x3]  ;;  %s1428_s25 = sld [smem:[#allocation24_spill]]  ;;  %s818_s8 = sshll.u32 %s1131_s12, 3 }
  0x42   : > { %s457_s27 = scalar_lea.vmem %s1395_s1, %s1324_s11  ;;  %v565_v13 = vsel %vm563_vm1, %v558_v12, 0  ;;  %v919_v33 = vld [vmem:[%s399_s30] ss:$0 sm:$0xff]  ;;  %s788_s22 = sshll.u32 %s1300_s18, 3 }
  0x43   : > { %494 = vmatpush.bf16.msra.mxu0 %v821_v1  ;;  %v918_v6 = vld [vmem:[%s457_s27] ss:$0 sm:$0xff]  ;;  %574 = vmatpush.bf16.msra.mxu2 %v565_v13  ;;  %s1429_s26 = sld [smem:[#allocation25_spill]]  ;;  %s624_s30 = scalar_lea.sflag [#allocation4], %s1300_s18 }
  0x44   : > { %532 = vmatpush.bf16.msra.mxu1 %v823_v4  ;;  %616 = vmatpush.bf16.msra.mxu3 %v825_v32 }
  0x46   : > { %797 = vmatmul.msk.bf16.vlgmr.msra.gmra.mxu0 %vm483_vm0, %v462_v2 }
  0x47   : > { %s460_s7 = scalar_lea.vmem %s1428_s25, %s1324_s11  ;;  %s454_s11 = scalar_lea.vmem [#allocation10], %s788_s22 }
  0x48   : > { %v920_v38 = vld [vmem:[%s460_s7] ss:$0 sm:$0xff]  ;;  %s637_s29 = sshll.u32 %s454_s11, 4  ;;  %s638_s29 = int_to_ptr.vmem [resolvable:$true] %s637_s29 }
  0x49   : > { %s635_s28 = scalar_lea.hbm %s1429_s26, %s818_s8  ;;  %s1065_s23 = scalar_lea.hbm %s1429_s26, 16 }
  0x4a   : > { %s639_s15 = sshll.u32 %s635_s28, 4  ;;  %s640_s15 = int_to_ptr.hbm [resolvable:$true] %s639_s15 }
  0x4b   : > { %s1059_s16 = sshra.s32 %s640_s15, 4  ;;  %s1060_s16 = int_to_ptr.hbm [resolvable:$true] %s1059_s16 }
  0x4c   : > { %s1061_s12 = scalar_lea.hbm %s1060_s16, 8  ;;  %p1066_p12 = scmp.lt.s32.totalorder %s1060_s16, %s1429_s26 }
  0x4d   : > { %p1062_p1 = scmp.ne.s32.totalorder %s1060_s16, %s1061_s12  ;;  %p1067_p13 = scmp.lt.s32.totalorder %s1065_s23, %s1061_s12 }
  0x4f   : > { %p1063_p4 = pnand %p1062_p1, %p1274_p7  ;;  %p1068_p0 = por %p1067_p13, %p1066_p12 }
  0x51   : > { %p1064_p11 = pneg %p1063_p4 }
  0x53   : > { %p1069_p3 = pnand %p1068_p0, %p1064_p11 }
  0xc3   : > { %v496_v7 = vpop.f32.mrf.mxu0 }
  0xc4   : > { %v497_v8 = vadd.f32 %v917_v5, %v496_v7 }
  0xc6   : > { %v504_v9 = vmul.f32 %v918_v6, %v497_v8 }
  0xc8   : > { %v505_v10 = vpack.c.bf16 %v504_v9, %v504_v9 }
  0xca   : > { %806 = vmatmul.msk.bf16.vlgmr.msra.gmra.mxu1 %vm483_vm0, %v505_v10 }
  0xcb   : > { %v498_v11 = vpop.f32.mrf.mxu0 }
 0x147   : > { %v534_v14 = vpop.f32.mrf.mxu1 }
 0x148   : > { %v538_v15 = vsub.f32 0.0, %v534_v14 }
 0x14a   : > { %v539_v17 = vmul.f32 1.442695, %v538_v15 }
 0x14c   : > { %921 = vpow2.f32 %v539_v17 }
 0x14f   : > { %v536_v18 = vpop.f32.mrf.mxu1 }
 0x152   : > { %v922_v19 = vpop.eup %921 }
 0x153   : > { %v541_v20 = vadd.f32 1.0, %v922_v19 }
 0x155   : > { %923 = vrcp.f32 %v541_v20  ;;  %v553_v24 = vand.u32 2147483648, %v541_v20  ;;  %v551_v26 = vand.u32 2147483647, %v541_v20  ;;  %vm547_vm3 = vweird.f32 %v541_v20 }
 0x157   : > { %v554_v28 = vor.u32 1.1754944e-38, %v553_v24  ;;  %vm552_vm5 = vcmp.eq.f32.partialorder %v551_v26, 8.507059e+37 }
 0x15b   : > { %v924_v21 = vpop.eup %923 }
 0x15c   : > { %v543_v22 = vmul.f32 %v924_v21, %v541_v20  ;;  %vm548_vm2 = vweird.f32 %v924_v21 }
 0x15d   : > { %vm549_vm4 = vmor %vm547_vm3, %vm548_vm2 }
 0x15e   : > { %v544_v23 = vsub.f32 1.0, %v543_v22 }
 0x160   : > { %v545_v25 = vmul.f32 %v924_v21, %v544_v23 }
 0x162   : > { %v546_v27 = vadd.f32 %v924_v21, %v545_v25 }
 0x164   : > { %v550_v29 = vsel %vm549_vm4, %v924_v21, %v546_v27 }
 0x165   : > { %v555_v30 = vsel %vm552_vm5, %v554_v28, %v550_v29 }
 0x166   : > { %v557_v31 = vpack.c.bf16 %v555_v30, %v555_v30 }
 0x168   : > { %807 = vmatmul.msk.bf16.vlgmr.msra.gmra.mxu2 %vm559_vm6, %v557_v31 }
 0x1eb   : > { %v576_v34 = vpop.f32.mrf.mxu2 }
 0x1ec   : > { %v584_v35 = vmul.f32 %v919_v33, %v576_v34 }
 0x1ee   : > { %v585_v36 = vpack.c.bf16 %v584_v35, %v584_v35 }
 0x1f0   : > { %816 = vmatmul.msk.bf16.vlgmr.msra.gmra.mxu3 %vm483_vm0, %v585_v36 }
 0x1f3   : > { %v578_v37 = vpop.f32.mrf.mxu2 }
 0x273   : > { %v618_v39 = vpop.f32.mrf.mxu3 }
 0x274   : > { %v619_v40 = vadd.f32 %v920_v38, %v618_v39 }
 0x276   : > { %622 = vst.msk [vmem:[%s454_s11] sm:$0xff] %vm483_vm0, %v619_v40 }
 0x277   : > { %1072 = shalt.err (!%p1069_p3)
}
 0x278   : > { %839 = dma.vmem_to_hbm [thread:$0]  (%p1274_p7), %s638_s29, 128, %s640_s15, %s624_s30  }
 0x27b   : > { %v620_v41 = vpop.f32.mrf.mxu3 }
 0x27c PF: > { %s1431_s18 = sld [smem:[#allocation16_spill]]  ;;  %p856_p5 = pnand %p781_p9, %p1240_p6 }
 0x27e   : > { %p857_p10 = pneg %p856_p5 }
 0x282   : > { %s651_s25 = sand.u32 1, %s1431_s18  }
 0x283   : > { %s652_s7 = scalar_lea.sflag [#allocation4], %s651_s25 }
 0x284   : > { %1114 = dma.done.wait (%p857_p10), %s652_s7, 128  }
 0x285   : > { %1116 = vsyncadd (%p857_p10), %s652_s7, 4294967168  ;;  %s29_s14 = sadd.s32 1, %s1139_s14   ;;  %s1433_s8 = sld [smem:[#allocation17_spill]] }
 0x286   : > { %p26_p2 = scmp.ge.s32.totalorder %s29_s14, 4   ;;  %s1434_s11 = sld [smem:[#allocation21_spill]] }
 0x287   : > { %s1435_s22 = sld [smem:[#allocation19_spill]]  ;;  %s1436_s30 = smov %s1123_s10 }
 0x288   : > { %s1438_s12 = smov %s1135_s13 }
 0x289   :  { %28 = sbr.rel (!%p26_p2) target bundleno = 14 (0xe), region = 128 }
 0x28b   : > { %s1437_s10 = smov %s1433_s8 }
 0x28d   : > { %s1439_s13 = smov %s1435_s22 }
 0x28e   :  { %658 = vsyncpa [#allocation3], 1 }
 0x28f   :  { %660 = vsyncpa [#allocation3 + $0x1], 1 }
 0x290   :  { %661 = vsyncpa [#allocation6], 1 }
 0x291   :  { %663 = vsyncpa [#allocation6 + $0x1], 1 }
 0x292   :  { %664 = vsyncpa [#allocation9], 1 }
 0x293   :  { %665 = vsyncpa [#allocation4], 1 }
 0x294   :  { %667 = vsyncpa [#allocation4 + $0x1], 1 }

// kernel: tpu_custom_call.1
= control target key start
LH: loop header
LB: loop body
LE: loop exit
PB: predicated region body
PF: predicated region fallthrough
CT: control target
= control target key end

     0   :  { %s1394_s0 = inlined_call_operand.hbm [shape: bf16[2,8,32], index: 0, kind: input, shape index: {}]   ;;  %s1395_s1 = inlined_call_operand.vmem [shape: f32[2,1,32], index: 1, kind: input, shape index: {}]   ;;  %s1396_s2 = inlined_call_operand.hbm [shape: f32[2,1,32], index: 2, kind: input, shape index: {}]   ;;  %s1397_s3 = inlined_call_operand.vmem [shape: bf16[32,32], index: 3, kind: input, shape index: {}]   ;;  %s1398_s4 = inlined_call_operand.hbm [shape: f32[1,32], index: 4, kind: input, shape index: {}]   ;;  %s1399_s5 = inlined_call_operand.vmem [shape: bf16[32,4], index: 5, kind: input, shape index: {}]   ;;  %s1400_s6 = inlined_call_operand.vmem [shape: bf16[4,32], index: 6, kind: input, shape index: {}]   ;;  %s1401_s7 = inlined_call_operand.hbm [shape: bf16[32,32], index: 7, kind: input, shape index: {}]   ;;  %s1402_s8 = inlined_call_operand.vmem [shape: f32[2,1,32], index: 8, kind: input, shape index: {}]   ;;  %s1403_s9 = inlined_call_operand.hbm [shape: f32[2,8,32], index: 9, kind: output, shape index: {}]  }
   0x1   :  { %1411 = sst [smem:[#allocation22_spill]] %s1398_s4 }
   0x2   :  { %1412 = sst [smem:[#allocation23_spill]] %s1401_s7 }
   0x3   :  { %1413 = sst [smem:[#allocation24_spill]] %s1402_s8 }
   0x4   :  { %1414 = sst [smem:[#allocation25_spill]] %s1403_s9 }
   0x5   :  { %14 = vsyncpa [#allocation3], 0 }
   0x6   :  { %16 = vsyncpa [#allocation3 + $0x1], 0 }
   0x7   :  { %17 = vsyncpa [#allocation6], 0 }
   0x8   :  { %19 = vsyncpa [#allocation6 + $0x1], 0 }
   0x9   :  { %20 = vsyncpa [#allocation9], 0 }
   0xa   :  { %21 = vsyncpa [#allocation4], 0 }
   0xb   :  { %23 = vsyncpa [#allocation4 + $0x1], 0  ;;  %s1195_s30 = smov 0   ;;  %s1197_s10 = smov 0  }
   0xc   :  { %s1199_s11 = smov 0   ;;  %s1201_s12 = smov 0  }
   0xd   :  { %s1203_s13 = smov 0   ;;  %s1205_s14 = smov 0  }
   0xe LB: > { %1415 = sst [smem:[#allocation16_spill]] %s1119_s30  ;;  %s1226_s15 = sadd.s32 4294967295, %s1139_s14   ;;  %s1139_s14 = sphi %s1205_s14, %s29_s14   ;;  %s1135_s13 = sphi %s1203_s13, %s1439_s13   ;;  %s1131_s12 = sphi %s1201_s12, %s1438_s12   ;;  %s1127_s11 = sphi %s1199_s11, %s1434_s11   ;;  %s1123_s10 = sphi %s1197_s10, %s1437_s10   ;;  %s1119_s30 = sphi %s1195_s30, %s1436_s30  }
   0xf   : > { %1416 = sst [smem:[#allocation17_spill]] %s1127_s11  ;;  %s777_s16 = sadd.s32 4294967294, %s1139_s14  }
  0x10   : > { %p63_p0 = scmp.ne.s32.totalorder %s1123_s10, %s1119_s30  ;;  %p64_p1 = scmp.eq.s32.totalorder %s1226_s15, 0 }
  0x11   : > { %p272_p2 = scmp.eq.s32.totalorder %s1226_s15, 1  ;;  %p278_p3 = scmp.eq.s32.totalorder %s777_s16, 1 }
  0x12   : > { %p1235_p4 = por %p64_p1, %p63_p0  ;;  %p778_p5 = scmp.ge.s32.totalorder %s1139_s14, 1 }
  0x13   : > { %p1240_p6 = por %p278_p3, %p63_p0  ;;  %p285_p7 = scmp.lt.s32.totalorder %s1139_s14, 3 }
  0x14   : > { %s1420_s4 = sld [smem:[#allocation22_spill]]  ;;  %p781_p9 = scmp.ge.s32.totalorder %s1139_s14, 2 }
  0x15   : > { %s1418_s18 = scalar_select %p1240_p6, 1, 0 }
  0x16   : > { %p1248_p8 = pnand %p778_p5, %p285_p7  ;;  %s1141_s23 = smov [#allocation7]  }
  0x17   : > { %1419 = sst [smem:[#allocation18_spill]] %s1418_s18  ;;  %s302_s24 = sshll.u32 %s1141_s23, 4  ;;  %s303_s24 = int_to_ptr.vmem [resolvable:$true] %s302_s24 }
  0x18   : > { %p841_p10 = pneg %p1248_p8  ;;  %s1422_s7 = sld [smem:[#allocation23_spill]] }
  0x19   : > { %s1142_s28 = smov [#allocation8]   ;;  %s1143_s16 = smov 64  }
  0x1a   : > { %s300_s21 = sshll.u32 %s1420_s4, 4  ;;  %p842_p11 = pnand %p841_p10, %p64_p1  ;;  %s301_s21 = int_to_ptr.hbm [resolvable:$true] %s300_s21 }
  0x1b   : > { %s319_s29 = sshll.u32 %s1142_s28, 4  ;;  %s1144_s19 = smov 4   ;;  %s320_s29 = int_to_ptr.vmem [resolvable:$true] %s319_s29 }
  0x1c   : > { %844 = dma.hbm_to_vmem [thread:$0]  (!%p842_p11), %s301_s21, 16, %s303_s24, [#allocation6]  }
  0x1d   : > { %s41_s20 = sadd.s32 1, %s1135_s13  ;;  %s50_s23 = sadd.s32 1, %s1127_s11 }
  0x1e   : > { %s317_s27 = sshll.u32 %s1422_s7, 4  ;;  %p43_p12 = scmp.ge.s32.totalorder %s41_s20, 2  ;;  %s318_s27 = int_to_ptr.hbm [resolvable:$true] %s317_s27 }
  0x1f   : > { %847 = dma.hbm_to_vmem [thread:$0]  (!%p842_p11), %s318_s27, 256, %s320_s29, [#allocation9], %s1143_s16, %s1143_s16, %s1144_s19  }
  0x20   : > { %p57_p13 = scmp.ne.s32.totalorder %s1127_s11, %s1123_s10  ;;  %p58_p0 = scmp.eq.s32.totalorder %s1139_s14, 0 }
  0x21   : > { %p861_p3 = scmp.lt.s32.totalorder %s1139_s14, 2  ;;  %s1441_s20 = smov (%p43_p12, %s41_s20), 0 }
  0x22   : > { %1423 = sst [smem:[#allocation19_spill]] %s1441_s20  ;;  %p1268_p5 = por %p58_p0, %p57_p13 }
  0x23   : > { %p1274_p7 = por %p272_p2, %p57_p13  ;;  %s45_s24 = ssub.s32 %s1135_s13, %s1441_s20 }
  0x24   : > { %s333_s26 = sand.u32 1, %s1127_s11   ;;  %p48_p10 = scmp.eq.s32.totalorder %s45_s24, 0 }
  0x25   : > { %s1425_s21 = scalar_select %p1274_p7, 1, 0 }
  0x26   : > { %s782_s27 = sshll.u32 %s333_s26, 2  ;;  %s783_s28 = sshll.u32 %s1135_s13, 2 }
  0x27   : > { %1426 = sst [smem:[#allocation20_spill]] %s1425_s21  ;;  %s342_s4 = scalar_lea.hbm %s1394_s0, %s783_s28 }
  0x28   : > { %s1283_s29 = scalar_select %p48_p10, %s1127_s11, %s50_s23  }
  0x29   : > { %s344_s7 = sshll.u32 %s342_s4, 4  ;;  %s337_s18 = scalar_lea.vmem [#allocation2], %s782_s27  ;;  %s345_s7 = int_to_ptr.hbm [resolvable:$true] %s344_s7 }
  0x2a   : > { %1427 = sst [smem:[#allocation21_spill]] %s1283_s29  ;;  %s346_s30 = sshll.u32 %s337_s18, 4  ;;  %s347_s30 = int_to_ptr.vmem [resolvable:$true] %s346_s30 }
  0x2b   : > { %p849_p2 = pnand %p861_p3, %p1268_p5  ;;  %s359_s21 = sand.u32 1, %s1139_s14  }
  0x2c   : > { %s365_s24 = scalar_lea.hbm %s1396_s2, %s1135_s13  ;;  %s334_s8 = scalar_lea.sflag [#allocation3], %s333_s26 }
  0x2d   : > { %851 = dma.hbm_to_vmem [thread:$0]  (!%p849_p2), %s345_s7, 64, %s347_s30, %s334_s8  }
  0x2e   : > { %s367_s23 = sshll.u32 %s365_s24, 4  ;;  %s362_s29 = scalar_lea.vmem [#allocation5], %s333_s26  ;;  %s368_s23 = int_to_ptr.hbm [resolvable:$true] %s367_s23 }
  0x2f   : > { %s369_s11 = sshll.u32 %s362_s29, 4  ;;  %s360_s4 = scalar_lea.sflag [#allocation6], %s359_s21  ;;  %s370_s11 = int_to_ptr.vmem [resolvable:$true] %s369_s11 }
  0x30   : > { %854 = dma.hbm_to_vmem [thread:$0]  (!%p849_p2), %s368_s23, 16, %s370_s11, %s360_s4  }
  0x31   : > { %384 = sbr.rel (%p1248_p8) target bundleno = 636 (0x27c), region = 56  ;;  %s1300_s18 = sand.u32 (!%p1248_p8), 1, %s1123_s10  }
  0x32   : > { %s785_s9 = sshll.u32 (!%p1248_p8), %s1300_s18, 2  ;;  %s387_s20 = scalar_lea.sflag (!%p1248_p8), [#allocation3], %s1300_s18 }
  0x33   : > { %s390_s25 = scalar_lea.vmem (!%p1248_p8), [#allocation2], %s785_s9 }
  0x36   : > { %1098 = dma.done.wait (%p1235_p4), %s387_s20, 64  }
  0x37   : > { %1100 = vsyncadd (%p1235_p4), %s387_s20, 4294967232  ;;  %s396_s7 = sand.u32 1, %s1226_s15   ;;  %s399_s30 = scalar_lea.vmem [#allocation5], %s1300_s18 }
  0x38   : > { %s397_s8 = scalar_lea.sflag [#allocation6], %s396_s7 }
  0x39   : > { %1102 = dma.done.wait (%p1235_p4), %s397_s8, 16  }
  0x3a   : > { %1104 = vsyncadd (%p1235_p4), %s397_s8, 4294967280 }
  0x3b   : > { %1106 = dma.done.wait (%p64_p1), [#allocation6], 16  }
  0x3c   : > { %1108 = vsyncadd (%p64_p1), [#allocation6], 4294967280 }
  0x3d   : > { %1110 = dma.done.wait (%p64_p1), [#allocation9], 256  }
  0x3e   : > { %1112 = vsyncadd (%p64_p1), [#allocation9], 4294967040  ;;  %p455_p8 = scmp.lt.s32.totalorder %s1131_s12, 1  ;;  %v822_v0 = vld [vmem:[%s1397_s3 + $0x8] sm:$0xff]  ;;  %v821_v1 = vld [vmem:[%s1397_s3] sm:$0xff]  ;;  %vm483_vm0 = vcmask 261120  }
  0x3f   : > { %493 = vmatpush.bf16.msra.mxu0 %v822_v0  ;;  %v462_v2 = vld [vmem:[%s390_s25] sm:$0xf]  ;;  %v824_v3 = vld [vmem:[%s1399_s5 + $0x8] sm:$0xff]  ;;  %vm563_vm1 = vcmask 1041408   ;;  %v826_v16 = vld [vmem:[#allocation8 + $0x8] sm:$0xff]  ;;  %vm559_vm6 = vcmask 31744  }
  0x40   : > { %s1324_s11 = scalar_select %p455_p8, %s1131_s12, 1  ;;  %531 = vmatpush.bf16.msra.mxu1 %v824_v3  ;;  %v823_v4 = vld [vmem:[%s1399_s5] sm:$0xff]  ;;  %v917_v5 = vld [vmem:[#allocation7] ss:$0 sm:$0xff]  ;;  %615 = vmatpush.bf16.msra.mxu3 %v826_v16  ;;  %v825_v32 = vld [vmem:[#allocation8] sm:$0xff] }
  0x41   : > { %v558_v12 = vld [vmem:[%s1400_s6] sm:$0x3]  ;;  %s1428_s25 = sld [smem:[#allocation24_spill]]  ;;  %s818_s8 = sshll.u32 %s1131_s12, 3 }
  0x42   : > { %s457_s27 = scalar_lea.vmem %s1395_s1, %s1324_s11  ;;  %v565_v13 = vsel %vm563_vm1, %v558_v12, 0  ;;  %v919_v33 = vld [vmem:[%s399_s30] ss:$0 sm:$0xff]  ;;  %s788_s22 = sshll.u32 %s1300_s18, 3 }
  0x43   : > { %494 = vmatpush.bf16.msra.mxu0 %v821_v1  ;;  %v918_v6 = vld [vmem:[%s457_s27] ss:$0 sm:$0xff]  ;;  %574 = vmatpush.bf16.msra.mxu2 %v565_v13  ;;  %s1429_s26 = sld [smem:[#allocation25_spill]]  ;;  %s624_s30 = scalar_lea.sflag [#allocation4], %s1300_s18 }
  0x44   : > { %532 = vmatpush.bf16.msra.mxu1 %v823_v4  ;;  %616 = vmatpush.bf16.msra.mxu3 %v825_v32 }
  0x46   : > { %797 = vmatmul.msk.bf16.vlgmr.msra.gmra.mxu0 %vm483_vm0, %v462_v2 }
  0x47   : > { %s460_s7 = scalar_lea.vmem %s1428_s25, %s1324_s11  ;;  %s454_s11 = scalar_lea.vmem [#allocation10], %s788_s22 }
  0x48   : > { %v920_v38 = vld [vmem:[%s460_s7] ss:$0 sm:$0xff]  ;;  %s637_s29 = sshll.u32 %s454_s11, 4  ;;  %s638_s29 = int_to_ptr.vmem [resolvable:$true] %s637_s29 }
  0x49   : > { %s635_s28 = scalar_lea.hbm %s1429_s26, %s818_s8  ;;  %s1065_s23 = scalar_lea.hbm %s1429_s26, 16 }
  0x4a   : > { %s639_s15 = sshll.u32 %s635_s28, 4  ;;  %s640_s15 = int_to_ptr.hbm [resolvable:$true] %s639_s15 }
  0x4b   : > { %s1059_s16 = sshra.s32 %s640_s15, 4  ;;  %s1060_s16 = int_to_ptr.hbm [resolvable:$true] %s1059_s16 }
  0x4c   : > { %s1061_s12 = scalar_lea.hbm %s1060_s16, 8  ;;  %p1066_p12 = scmp.lt.s32.totalorder %s1060_s16, %s1429_s26 }
  0x4d   : > { %p1062_p1 = scmp.ne.s32.totalorder %s1060_s16, %s1061_s12  ;;  %p1067_p13 = scmp.lt.s32.totalorder %s1065_s23, %s1061_s12 }
  0x4f   : > { %p1063_p4 = pnand %p1062_p1, %p1274_p7  ;;  %p1068_p0 = por %p1067_p13, %p1066_p12 }
  0x51   : > { %p1064_p11 = pneg %p1063_p4 }
  0x53   : > { %p1069_p3 = pnand %p1068_p0, %p1064_p11 }
  0xc3   : > { %v496_v7 = vpop.f32.mrf.mxu0 }
  0xc4   : > { %v497_v8 = vadd.f32 %v917_v5, %v496_v7 }
  0xc6   : > { %v504_v9 = vmul.f32 %v918_v6, %v497_v8 }
  0xc8   : > { %v505_v10 = vpack.c.bf16 %v504_v9, %v504_v9 }
  0xca   : > { %806 = vmatmul.msk.bf16.vlgmr.msra.gmra.mxu1 %vm483_vm0, %v505_v10 }
  0xcb   : > { %v498_v11 = vpop.f32.mrf.mxu0 }
 0x147   : > { %v534_v14 = vpop.f32.mrf.mxu1 }
 0x148   : > { %v538_v15 = vsub.f32 0.0, %v534_v14 }
 0x14a   : > { %v539_v17 = vmul.f32 1.442695, %v538_v15 }
 0x14c   : > { %921 = vpow2.f32 %v539_v17 }
 0x14f   : > { %v536_v18 = vpop.f32.mrf.mxu1 }
 0x152   : > { %v922_v19 = vpop.eup %921 }
 0x153   : > { %v541_v20 = vadd.f32 1.0, %v922_v19 }
 0x155   : > { %923 = vrcp.f32 %v541_v20  ;;  %v553_v24 = vand.u32 2147483648, %v541_v20  ;;  %v551_v26 = vand.u32 2147483647, %v541_v20  ;;  %vm547_vm3 = vweird.f32 %v541_v20 }
 0x157   : > { %v554_v28 = vor.u32 1.1754944e-38, %v553_v24  ;;  %vm552_vm5 = vcmp.eq.f32.partialorder %v551_v26, 8.507059e+37 }
 0x15b   : > { %v924_v21 = vpop.eup %923 }
 0x15c   : > { %v543_v22 = vmul.f32 %v924_v21, %v541_v20  ;;  %vm548_vm2 = vweird.f32 %v924_v21 }
 0x15d   : > { %vm549_vm4 = vmor %vm547_vm3, %vm548_vm2 }
 0x15e   : > { %v544_v23 = vsub.f32 1.0, %v543_v22 }
 0x160   : > { %v545_v25 = vmul.f32 %v924_v21, %v544_v23 }
 0x162   : > { %v546_v27 = vadd.f32 %v924_v21, %v545_v25 }
 0x164   : > { %v550_v29 = vsel %vm549_vm4, %v924_v21, %v546_v27 }
 0x165   : > { %v555_v30 = vsel %vm552_vm5, %v554_v28, %v550_v29 }
 0x166   : > { %v557_v31 = vpack.c.bf16 %v555_v30, %v555_v30 }
 0x168   : > { %807 = vmatmul.msk.bf16.vlgmr.msra.gmra.mxu2 %vm559_vm6, %v557_v31 }
 0x1eb   : > { %v576_v34 = vpop.f32.mrf.mxu2 }
 0x1ec   : > { %v584_v35 = vmul.f32 %v919_v33, %v576_v34 }
 0x1ee   : > { %v585_v36 = vpack.c.bf16 %v584_v35, %v584_v35 }
 0x1f0   : > { %816 = vmatmul.msk.bf16.vlgmr.msra.gmra.mxu3 %vm483_vm0, %v585_v36 }
 0x1f3   : > { %v578_v37 = vpop.f32.mrf.mxu2 }
 0x273   : > { %v618_v39 = vpop.f32.mrf.mxu3 }
 0x274   : > { %v619_v40 = vadd.f32 %v920_v38, %v618_v39 }
 0x276   : > { %622 = vst.msk [vmem:[%s454_s11] sm:$0xff] %vm483_vm0, %v619_v40 }
 0x277   : > { %1072 = shalt.err (!%p1069_p3)
}
 0x278   : > { %839 = dma.vmem_to_hbm [thread:$0]  (%p1274_p7), %s638_s29, 128, %s640_s15, %s624_s30  }
 0x27b   : > { %v620_v41 = vpop.f32.mrf.mxu3 }
 0x27c PF: > { %s1431_s18 = sld [smem:[#allocation16_spill]]  ;;  %p856_p5 = pnand %p781_p9, %p1240_p6 }
 0x27e   : > { %p857_p10 = pneg %p856_p5 }
 0x282   : > { %s651_s25 = sand.u32 1, %s1431_s18  }
 0x283   : > { %s652_s7 = scalar_lea.sflag [#allocation4], %s651_s25 }
 0x284   : > { %1114 = dma.done.wait (%p857_p10), %s652_s7, 128  }
 0x285   : > { %1116 = vsyncadd (%p857_p10), %s652_s7, 4294967168  ;;  %s29_s14 = sadd.s32 1, %s1139_s14   ;;  %s1433_s8 = sld [smem:[#allocation17_spill]] }
 0x286   : > { %p26_p2 = scmp.ge.s32.totalorder %s29_s14, 4   ;;  %s1434_s11 = sld [smem:[#allocation21_spill]] }
 0x287   : > { %s1435_s22 = sld [smem:[#allocation19_spill]]  ;;  %s1436_s30 = smov %s1123_s10 }
 0x288   : > { %s1438_s12 = smov %s1135_s13 }
 0x289   :  { %28 = sbr.rel (!%p26_p2) target bundleno = 14 (0xe), region = 128 }
 0x28b   : > { %s1437_s10 = smov %s1433_s8 }
 0x28d   : > { %s1439_s13 = smov %s1435_s22 }
 0x28e   :  { %658 = vsyncpa [#allocation3], 1 }
 0x28f   :  { %660 = vsyncpa [#allocation3 + $0x1], 1 }
 0x290   :  { %661 = vsyncpa [#allocation6], 1 }
 0x291   :  { %663 = vsyncpa [#allocation6 + $0x1], 1 }
 0x292   :  { %664 = vsyncpa [#allocation9], 1 }
 0x293   :  { %665 = vsyncpa [#allocation4], 1 }
 0x294   :  { %667 = vsyncpa [#allocation4 + $0x1], 1 }

</bundles_post_ra>
